<compile_context>
chip_gen: v7x
topology: tpu7x:2x2x1
jax: 0.10.0
libtpu: 0.0.40
codegen_flags: <defaults>
</compile_context>

<pallas_src>
import math
from functools import lru_cache, partial

import jax
import jax.numpy as jnp
from jax.experimental import pallas as pl
from jax.experimental.pallas import tpu as pltpu

LANES = 128
MAX_BLOCK_ROWS = 2048   # (2048, 128) f32 = 1 MiB per operand block.
MAX_TAKE_ROWS = 16      # in-kernel gather for L <= 16*128 = 2048; larger rng
                        # tables are gathered by XLA (kernel would go XLU-bound).


def _round_up(x, m):
    return ((x + m - 1) // m) * m


# ---------------------------------------------------------------------------
# Kernels
# ---------------------------------------------------------------------------

def _take_gather_kernel(idx_ref, src_ref, tab_ref, out_ref, *, n_rows):
    """out = (src > rng_table[idx]) via per-table-row in-lane dynamic gather."""
    idx = idx_ref[...]                               # (tm, 128) int32
    src = src_ref[...].astype(jnp.float32)           # native dtype -> f32 (VPU, free)

    lo = idx % LANES                                 # lane within a table row
    if n_rows == 1:
        row = jnp.broadcast_to(tab_ref[0:1, :], idx.shape)
        vals = jnp.take_along_axis(row, lo, axis=-1)
    else:
        hi = idx // LANES                            # which table row
        vals = jnp.zeros(idx.shape, jnp.float32)
        for h in range(n_rows):                      # small, static trip count
            # Read one table row from the ref per iteration: bounds the live
            # range to a single (1, 128) row instead of the whole table.
            row = jnp.broadcast_to(tab_ref[h:h + 1, :], idx.shape)
            cand = jnp.take_along_axis(row, lo, axis=-1)
            vals = jnp.where(hi == h, cand, vals)

    # NB: out-of-range / negative rng_idx compares source against 0.0 instead
    # of raising like PyTorch; BSGen always uses 0 <= rng_idx < len(rng_seq).
    out_ref[...] = (src > vals).astype(out_ref.dtype)


def _compare_kernel(src_ref, vals_ref, out_ref):
    """out = (src > vals); used when the gather was hoisted to the wrapper."""
    out_ref[...] = (src_ref[...].astype(jnp.float32) > vals_ref[...]).astype(out_ref.dtype)


# ---------------------------------------------------------------------------
# pallas_call builders
# ---------------------------------------------------------------------------

def _bsgen_take_call(idx2, src2, table, out_dtype, tm, n_rows):
    rows = idx2.shape[0]
    tile_spec = pl.BlockSpec((tm, LANES), lambda i: (i, 0))
    tab_spec = pl.BlockSpec(table.shape, lambda i: (0, 0))
    return pl.pallas_call(
        partial(_take_gather_kernel, n_rows=n_rows),
        out_shape=jax.ShapeDtypeStruct((rows, LANES), out_dtype),
        grid_spec=pltpu.PrefetchScalarGridSpec(
            num_scalar_prefetch=0,
            grid=(pl.cdiv(rows, tm),),            # ragged final block is masked
            in_specs=[tile_spec, tile_spec, tab_spec],
            out_specs=tile_spec,
        ),
        compiler_params=pltpu.CompilerParams(
            dimension_semantics=("parallel",),
            vmem_limit_bytes=32 * 1024 * 1024,     # v5e default is only 16 MiB
        ),
    )(idx2, src2, table)


def _bsgen_compare_call(src2, vals2, out_dtype, tm):
    rows = src2.shape[0]
    tile_spec = pl.BlockSpec((tm, LANES), lambda i: (i, 0))
    return pl.pallas_call(
        _compare_kernel,
        out_shape=jax.ShapeDtypeStruct((rows, LANES), out_dtype),
        grid_spec=pltpu.PrefetchScalarGridSpec(
            num_scalar_prefetch=0,
            grid=(pl.cdiv(rows, tm),),
            in_specs=[tile_spec, tile_spec],
            out_specs=tile_spec,
        ),
        compiler_params=pltpu.CompilerParams(
            dimension_semantics=("parallel",),
            vmem_limit_bytes=32 * 1024 * 1024,
        ),
    )(src2, vals2)


@lru_cache(maxsize=None)
def _lane_gather_supported():
    """One-time probe: does the in-lane take_along_axis gather lower & compute right?"""
    try:
        probe_len = 2 * LANES
        rng_flat = (jnp.arange(probe_len, dtype=jnp.float32) + 1.0) / (probe_len + 1.0)
        table = jnp.pad(rng_flat, (0, 8 * LANES - probe_len)).reshape(8, LANES)
        idx2 = ((jnp.arange(32 * LANES, dtype=jnp.int32) * 37) % probe_len).reshape(32, LANES)
        src2 = jnp.full((32, LANES), 0.5, dtype=jnp.float32)
        out = _bsgen_take_call(idx2, src2, table, jnp.dtype(jnp.float32), tm=32, n_rows=2)
        out = jax.block_until_ready(out)
        ref = (src2 > rng_flat[idx2]).astype(jnp.float32)
        return bool(jnp.array_equal(out, ref))
    except Exception:
        return False


# ---------------------------------------------------------------------------
# Forward wrapper
# ---------------------------------------------------------------------------

def _pick_tm(rows):
    if rows >= 1024:
        # Enough work: target >= 4 grid steps (>= 2 per TensorCore on v7x),
        # with blocks capped at MAX_BLOCK_ROWS (1 MiB of f32 per operand).
        return min(MAX_BLOCK_ROWS, _round_up(pl.cdiv(rows, 4), 32))
    # Small: one full-extent block (always a legal block shape, no padding).
    return rows


@partial(jax.jit, static_argnames=("stype", "use_take"))
def _bsgen_forward_impl(source, rng_seq, rng_idx, *, stype, use_take):
    orig_shape = source.shape
    n = math.prod(orig_shape)
    seq_len = int(rng_seq.shape[0])
    n_rows = pl.cdiv(seq_len, LANES)              # rng-table rows = ceil(L/128)

    if source.dtype == jnp.float64:               # only if x64 is enabled
        source = source.astype(jnp.float32)

    # Lane-dense (rows, 128) slab.  Only a < 128-element tail is ever padded;
    # block misalignment along rows is handled by a ragged final grid block.
    rows = pl.cdiv(n, LANES)
    n_pad = rows * LANES
    src_flat = source.reshape(-1)                 # native dtype: no upcast copy
    idx_flat = rng_idx.reshape(-1).astype(jnp.int32)
    if n_pad != n:
        src_flat = jnp.pad(src_flat, (0, n_pad - n))
        idx_flat = jnp.pad(idx_flat, (0, n_pad - n))
    src2 = src_flat.reshape(rows, LANES)
    idx2 = idx_flat.reshape(rows, LANES)

    tm = _pick_tm(rows)
    rng_f32 = rng_seq.astype(jnp.float32).reshape(-1)

    if use_take and n_rows <= MAX_TAKE_ROWS:
        # In-kernel gather against a small lane-dense rng table (<= 8 KiB VMEM).
        tab_rows = _round_up(n_rows, 8)
        table = rng_f32
        if tab_rows * LANES != seq_len:
            table = jnp.pad(rng_f32, (0, tab_rows * LANES - seq_len))
        table = table.reshape(tab_rows, LANES)
        out2 = _bsgen_take_call(idx2, src2, table, stype, tm, n_rows)
    else:
        # Large rng table (or in-lane gather unsupported): hoist the gather to
        # XLA and keep the kernel a pure, HBM-roofline-bound compare.
        vals2 = jnp.take(rng_f32, idx2, axis=0)
        out2 = _bsgen_compare_call(src2, vals2, stype, tm)

    if n_pad == n:
        return out2.reshape(orig_shape)
    return out2.reshape(-1)[:n].reshape(orig_shape)


def bsgen_forward(source, rng_seq, rng_idx, stype=jnp.float32):
    """Pallas BSGen.forward: (source > rng_seq[rng_idx]).astype(stype)."""
    assert source.shape == rng_idx.shape, "rng_idx must match source shape"
    return _bsgen_forward_impl(source, rng_seq, rng_idx,
                               stype=jnp.dtype(stype),
                               use_take=_lane_gather_supported())


if __name__ == "__main__":
    key = jax.random.PRNGKey(0)
    k_src, k_rng, k_idx = jax.random.split(key, 3)

    B, C, H, W = 2, 4, 16, 16   # NCHW, as a conv-style activation in UnarySim
    L = 256                     # rng sequence length

    # Module "parameters" (set at __init__ in PyTorch), built in-script.
    source = jax.random.uniform(k_src, (B, C, H, W), dtype=jnp.float32)
    rng_seq = jax.random.uniform(k_rng, (L,), dtype=jnp.float32)

    # Forward input: per-element indices into rng_seq.
    rng_idx = jax.random.randint(k_idx, (B, C, H, W), 0, L, dtype=jnp.int32)

    out = bsgen_forward(source, rng_seq, rng_idx)
    out = jax.block_until_ready(out)

    # Reference (pure JAX) check of the PyTorch semantics.
    ref = (source > rng_seq[rng_idx]).astype(jnp.float32)
    assert out.shape == (B, C, H, W)
    assert out.dtype == jnp.float32
    assert bool(jnp.all(out == ref))

    # Also exercise the large-table path (XLA gather + compare kernel) and a
    # bf16 source, so both code paths are verified on this backend.
    L2 = 4096
    rng_seq2 = jax.random.uniform(k_rng, (L2,), dtype=jnp.float32)
    rng_idx2 = jax.random.randint(k_idx, (B, C, H, W), 0, L2, dtype=jnp.int32)
    src_bf16 = source.astype(jnp.bfloat16)
    out2 = jax.block_until_ready(bsgen_forward(src_bf16, rng_seq2, rng_idx2))
    ref2 = (src_bf16.astype(jnp.float32) > rng_seq2[rng_idx2]).astype(jnp.float32)
    assert bool(jnp.all(out2 == ref2))

    print("KERNEL_OK")
</pallas_src>

<mosaic_0001>
module attributes {stable_mosaic.version = 11 : i64} {
  func.func @_compare_kernel(%arg0: i32, %arg1: memref<16x128xf32, #tpu.memory_space<vmem>>, %arg2: memref<16x128xf32, #tpu.memory_space<vmem>>, %arg3: memref<16x128xf32, #tpu.memory_space<vmem>>) attributes {dimension_semantics = [#tpu.dimension_semantics<parallel>], iteration_bounds = array<i64: 1>, scalar_prefetch = 0 : i64, scratch_operands = 0 : i64, tpu.core_type = #tpu.core_type<tc>, window_params = [{transform_indices = @transform_0, window_bounds = array<i64: 16, 128>}, {transform_indices = @transform_1, window_bounds = array<i64: 16, 128>}, {transform_indices = @transform_2, window_bounds = array<i64: 16, 128>}]} {
    %c0 = arith.constant 0 : index
    %c0_0 = arith.constant 0 : index
    %0 = vector.load %arg1[%c0, %c0_0] : memref<16x128xf32, #tpu.memory_space<vmem>>, vector<16x128xf32>
    %c0_1 = arith.constant 0 : index
    %c0_2 = arith.constant 0 : index
    %1 = vector.load %arg2[%c0_1, %c0_2] : memref<16x128xf32, #tpu.memory_space<vmem>>, vector<16x128xf32>
    %2 = arith.cmpf ogt, %0, %1 : vector<16x128xf32>
    %3 = arith.extui %2 : vector<16x128xi1> to vector<16x128xi32>
    %4 = arith.sitofp %3 : vector<16x128xi32> to vector<16x128xf32>
    %c0_3 = arith.constant 0 : index
    %c0_4 = arith.constant 0 : index
    %5 = vector.load %arg3[%c0_3, %c0_4] : memref<16x128xf32, #tpu.memory_space<vmem>>, vector<16x128xf32>
    tpu.vector_store %arg3[%c0_3, %c0_4], %4 {strides = array<i32>} : memref<16x128xf32, #tpu.memory_space<vmem>>, vector<16x128xf32>,
    return
  }
  func.func @transform_0(%arg0: i32) -> (i32, i32) {
    %c0_i32 = arith.constant 0 : i32
    %c0_i32_0 = arith.constant 0 : i32
    return %arg0, %c0_i32 : i32, i32
  }
  func.func @transform_1(%arg0: i32) -> (i32, i32) {
    %c0_i32 = arith.constant 0 : i32
    %c0_i32_0 = arith.constant 0 : i32
    return %arg0, %c0_i32 : i32, i32
  }
  func.func @transform_2(%arg0: i32) -> (i32, i32) {
    %c0_i32 = arith.constant 0 : i32
    %c0_i32_0 = arith.constant 0 : i32
    return %arg0, %c0_i32 : i32, i32
  }
}

</mosaic_0001>

<bundles_post_ra>
// kernel: _bsgen_forward_impl.1
= control target key start
LH: loop header
LB: loop body
LE: loop exit
PB: predicated region body
PF: predicated region fallthrough
CT: control target
= control target key end

     0   :  { %v30_v4 = vmov 0.0   ;;  %s64_s0 = inlined_call_operand.vmem [shape: f32[16,128], index: 0, kind: input, shape index: {}]   ;;  %s65_s1 = inlined_call_operand.vmem [shape: f32[16,128], index: 1, kind: input, shape index: {}]   ;;  %s66_s2 = inlined_call_operand.vmem [shape: f32[16,128], index: 2, kind: output, shape index: {}]  }
   0x1   :  { %v11_v0 = vld [vmem:[%s64_s0] sm:$0xff]  ;;  %v12_v2 = vld [vmem:[%s64_s0 + $0x8] sm:$0xff] }
   0x2   :  { %v13_v1 = vld [vmem:[%s65_s1] sm:$0xff]  ;;  %v14_v3 = vld [vmem:[%s65_s1 + $0x8] sm:$0xff] }
   0x3   :  { %vm15_vm0 = vcmp.gt.f32.partialorder %v11_v0, %v13_v1  ;;  %vm16_vm1 = vcmp.gt.f32.partialorder %v12_v2, %v14_v3 }
   0x4   :  { %v27_v5 = vsel %vm15_vm0, 1.0, %v30_v4  ;;  %v28_v6 = vsel %vm16_vm1, 1.0, %v30_v4 }
   0x5   :  { %21 = vst [vmem:[%s66_s2] sm:$0xff] %v27_v5  ;;  %22 = vst [vmem:[%s66_s2 + $0x8] sm:$0xff] %v28_v6 }

</bundles_post_ra>
